<compile_context>
chip_gen: v6e
topology: v6e:2x2x1
jax: 0.10.0
libtpu: 0.0.40
codegen_flags: <defaults>
</compile_context>

<pallas_src>
import jax
import jax.numpy as jnp
from jax.experimental import pallas as pl
from jax.experimental.pallas import tpu as pltpu


def median_layer_kernel(x_ref, wt_ref, w2_ref, o_ref):
    # x_ref : (tm, D)   batch tile
    # wt_ref: (D, Np)   weight, pre-transposed + lane-padded (resident)
    # w2_ref: (1, Np)   precomputed ||w||^2, lane-padded
    # o_ref : (tm, Np)  lane-dense output slab
    x = x_ref[...]
    wt = wt_ref[...]

    # MXU cross term: (tm, D) x (D, Np) -> (tm, Np). No in-kernel transpose.
    xw = jnp.dot(x, wt, preferred_element_type=jnp.float32)

    x2 = jnp.sum(x * x, axis=-1, keepdims=True)            # (tm, 1)
    d2 = jnp.maximum(x2 + w2_ref[...] - 2.0 * xw, 0.0)     # clamp cancellation
    o_ref[...] = -jnp.sqrt(d2)


def median_layer_forward(x, weight, *, tm=None):
    """-cdist(x, weight) computed in a Pallas TPU kernel.

    x:      (B, size_in)        float32
    weight: (size_out, size_in) float32
    returns (B, size_out)       float32
    """
    B, D = x.shape
    N, Dw = weight.shape
    assert D == Dw, "feature dims of x and weight must match"

    x = x.astype(jnp.float32)
    weight = weight.astype(jnp.float32)

    # Lane-dense output: pad size_out up to a multiple of 128.
    Np = max(128, ((N + 127) // 128) * 128)

    # Batch tile: as large as reasonable (amortize ~0.35 us/step overhead),
    # capped at 512 rows; pad B up to a multiple of tm instead of asserting.
    if tm is None:
        tm = min(512, ((B + 7) // 8) * 8)
    tm = max(8, ((tm + 7) // 8) * 8)
    Bp = ((B + tm - 1) // tm) * tm

    # Wrapper-side layout plumbing (one-time, XLA-side):
    x_p = jnp.pad(x, ((0, Bp - B), (0, 0)))                         # (Bp, D)
    wt = jnp.pad(weight.T, ((0, 0), (0, Np - N)))                    # (D, Np)
    w2 = jnp.pad(jnp.sum(weight * weight, axis=-1), (0, Np - N))     # (Np,)
    w2 = w2[None, :]                                                 # (1, Np)

    grid = (Bp // tm,)

    out = pl.pallas_call(
        median_layer_kernel,
        out_shape=jax.ShapeDtypeStruct((Bp, Np), jnp.float32),
        grid_spec=pltpu.PrefetchScalarGridSpec(
            num_scalar_prefetch=0,
            grid=grid,
            in_specs=[
                pl.BlockSpec((tm, D), lambda i: (i, 0)),    # x batch tile
                pl.BlockSpec((D, Np), lambda i: (0, 0)),    # resident weight^T
                pl.BlockSpec((1, Np), lambda i: (0, 0)),    # resident ||w||^2
            ],
            out_specs=pl.BlockSpec((tm, Np), lambda i: (i, 0)),
        ),
        compiler_params=pltpu.CompilerParams(
            dimension_semantics=("parallel",),
        ),
    )(x_p, wt, w2)

    # Slice away batch / lane padding.
    return out[:B, :N]


if __name__ == "__main__":
    # Small shapes consistent with the module: size_in=32, size_out=16, batch=16.
    B, size_in, size_out = 16, 32, 16

    key = jax.random.PRNGKey(0)
    kx, kw = jax.random.split(key)
    x = jax.random.normal(kx, (B, size_in), dtype=jnp.float32)
    # Deterministic synthetic "median" weights (stands in for the initiated state).
    weight = jax.random.normal(kw, (size_out, size_in), dtype=jnp.float32)

    out = median_layer_forward(x, weight)
    out = jax.block_until_ready(out)

    # Reference check against plain-JAX cdist (direct form).
    ref = -jnp.sqrt(
        jnp.maximum(
            jnp.sum((x[:, None, :] - weight[None, :, :]) ** 2, axis=-1), 0.0
        )
    )
    assert out.shape == (B, size_out)
    assert jnp.allclose(out, ref, atol=1e-4, rtol=1e-4)

    print("KERNEL_OK")
</pallas_src>

<mosaic_0001>
module attributes {stable_mosaic.version = 11 : i64} {
  func.func @median_layer_kernel(%arg0: i32, %arg1: memref<16x32xf32, #tpu.memory_space<vmem>>, %arg2: memref<32x128xf32, #tpu.memory_space<vmem>>, %arg3: memref<1x128xf32, #tpu.memory_space<vmem>>, %arg4: memref<16x128xf32, #tpu.memory_space<vmem>>) attributes {dimension_semantics = [#tpu.dimension_semantics<parallel>], iteration_bounds = array<i64: 1>, scalar_prefetch = 0 : i64, scratch_operands = 0 : i64, tpu.core_type = #tpu.core_type<tc>, window_params = [{transform_indices = @transform_0, window_bounds = array<i64: 16, 32>}, {pipeline_mode = #tpu.pipeline_mode<synchronous>, transform_indices = @transform_1, window_bounds = array<i64: 32, 128>}, {pipeline_mode = #tpu.pipeline_mode<synchronous>, transform_indices = @transform_2, window_bounds = array<i64: 1, 128>}, {transform_indices = @transform_3, window_bounds = array<i64: 16, 128>}]} {
    %c0 = arith.constant 0 : index
    %c0_0 = arith.constant 0 : index
    %0 = vector.load %arg1[%c0, %c0_0] : memref<16x32xf32, #tpu.memory_space<vmem>>, vector<16x32xf32>
    %c0_1 = arith.constant 0 : index
    %c0_2 = arith.constant 0 : index
    %1 = vector.load %arg2[%c0_1, %c0_2] : memref<32x128xf32, #tpu.memory_space<vmem>>, vector<32x128xf32>
    %cst = arith.constant dense<0.000000e+00> : vector<16x128xf32>
    %2 = tpu.matmul %0, %1, %cst {dimension_numbers = #tpu.dot_dimension_numbers<[1], [0], [0], [1], [0, 0, 1, 1], [], []>} : vector<16x32xf32>, vector<32x128xf32>, vector<16x128xf32> -> vector<16x128xf32>
    %3 = arith.mulf %0, %0 : vector<16x32xf32>
    %cst_3 = arith.constant dense<0.000000e+00> : vector<16xf32>
    %4 = vector.multi_reduction <add>, %3, %cst_3 [1] : vector<16x32xf32> to vector<16xf32>
    %5 = vector.shape_cast %4 : vector<16xf32> to vector<16x1xf32>
    %c0_4 = arith.constant 0 : index
    %c0_5 = arith.constant 0 : index
    %6 = vector.load %arg3[%c0_4, %c0_5] : memref<1x128xf32, #tpu.memory_space<vmem>>, vector<1x128xf32>
    %7 = vector.broadcast %5 : vector<16x1xf32> to vector<16x128xf32>
    %8 = vector.broadcast %6 : vector<1x128xf32> to vector<16x128xf32>
    %9 = arith.addf %7, %8 : vector<16x128xf32>
    %cst_6 = arith.constant 2.000000e+00 : f32
    %10 = vector.broadcast %cst_6 : f32 to vector<16x128xf32>
    %11 = arith.mulf %10, %2 : vector<16x128xf32>
    %12 = arith.subf %9, %11 : vector<16x128xf32>
    %cst_7 = arith.constant 0.000000e+00 : f32
    %13 = vector.broadcast %cst_7 : f32 to vector<16x128xf32>
    %14 = arith.maximumf %12, %13 : vector<16x128xf32>
    %15 = math.sqrt %14 : vector<16x128xf32>
    %cst_8 = arith.constant 0.000000e+00 : f32
    %16 = vector.broadcast %cst_8 : f32 to vector<16x128xf32>
    %17 = arith.subf %16, %15 : vector<16x128xf32>
    %c0_9 = arith.constant 0 : index
    %c0_10 = arith.constant 0 : index
    %18 = vector.load %arg4[%c0_9, %c0_10] : memref<16x128xf32, #tpu.memory_space<vmem>>, vector<16x128xf32>
    tpu.vector_store %arg4[%c0_9, %c0_10], %17 {strides = array<i32>} : memref<16x128xf32, #tpu.memory_space<vmem>>, vector<16x128xf32>,
    return
  }
  func.func @transform_0(%arg0: i32) -> (i32, i32) {
    %c0_i32 = arith.constant 0 : i32
    %c0_i32_0 = arith.constant 0 : i32
    return %arg0, %c0_i32 : i32, i32
  }
  func.func @transform_1(%arg0: i32) -> (i32, i32) {
    %c0_i32 = arith.constant 0 : i32
    %c0_i32_0 = arith.constant 0 : i32
    %c0_i32_1 = arith.constant 0 : i32
    return %c0_i32, %c0_i32_0 : i32, i32
  }
  func.func @transform_2(%arg0: i32) -> (i32, i32) {
    %c0_i32 = arith.constant 0 : i32
    %c0_i32_0 = arith.constant 0 : i32
    %c0_i32_1 = arith.constant 0 : i32
    return %c0_i32, %c0_i32_0 : i32, i32
  }
  func.func @transform_3(%arg0: i32) -> (i32, i32) {
    %c0_i32 = arith.constant 0 : i32
    %c0_i32_0 = arith.constant 0 : i32
    return %arg0, %c0_i32 : i32, i32
  }
}

</mosaic_0001>

<bundles_post_ra>
// kernel: tpu_custom_call.1
= control target key start
LH: loop header
LB: loop body
LE: loop exit
PB: predicated region body
PF: predicated region fallthrough
CT: control target
= control target key end

     0   :  { %8 = vsyncpa [#allocation3], 0  ;;  %s335_s0 = inlined_call_operand.hbm [shape: f32[16,32], index: 0, kind: input, shape index: {}]   ;;  %s336_s1 = inlined_call_operand.hbm [shape: f32[32,128], index: 1, kind: input, shape index: {}]   ;;  %s337_s2 = inlined_call_operand.vmem [shape: f32[1,128], index: 2, kind: input, shape index: {}]   ;;  %s338_s3 = inlined_call_operand.hbm [shape: f32[16,128], index: 3, kind: output, shape index: {}]  }
   0x1   :  { %9 = vsyncpa [#allocation6], 0 }
   0x2   :  { %10 = vsyncpa [#allocation4], 0  ;;  %s285_s12 = smov [#allocation2]  }
   0x3   :  { %s16_s13 = sshll.u32 %s285_s12, 4  ;;  %s17_s13 = int_to_ptr.vmem [resolvable:$true] %s16_s13 }
   0x4   :  { %s227_s14 = scalar_lea.vmem %s17_s13, 256  ;;  %p232_p1 = scmp.lt.s32.totalorder %s17_s13, %s17_s13 }
   0x5   :  { %p228_p0 = scmp.ne.s32.totalorder %s17_s13, %s227_s14  ;;  %p233_p2 = scmp.lt.s32.totalorder %s227_s14, %s227_s14 }
   0x7   :  { %p234_p3 = por %p233_p2, %p232_p1 }
   0x9   :  { %p235_p4 = pnand %p234_p3, %p228_p0 }
   0xb   :  { %238 = shalt.err (!%p235_p4)
}
   0xc   :  { %s286_s15 = smov 128   ;;  %s287_s16 = smov 8  }
   0xd   :  { %22 = dma.hbm_to_vmem [thread:$0]  %s335_s0, 256, %s17_s13, [#allocation3], %s286_s15, %s286_s15, %s287_s16  }
   0xe   :  { %s288_s19 = smov [#allocation5]  }
   0xf   :  { %s28_s20 = sshll.u32 %s288_s19, 4  ;;  %s29_s20 = int_to_ptr.vmem [resolvable:$true] %s28_s20 }
  0x10   :  { %s247_s21 = scalar_lea.vmem %s29_s20, 512  ;;  %p252_p6 = scmp.lt.s32.totalorder %s29_s20, %s29_s20 }
  0x11   :  { %p248_p5 = scmp.ne.s32.totalorder %s29_s20, %s247_s21  ;;  %p253_p7 = scmp.lt.s32.totalorder %s247_s21, %s247_s21 }
  0x13   :  { %p254_p8 = por %p253_p7, %p252_p6 }
  0x15   :  { %p255_p9 = pnand %p254_p8, %p248_p5 }
  0x17   :  { %258 = shalt.err (!%p255_p9)
}
  0x18   :  { %34 = dma.hbm_to_vmem [thread:$0]  %s336_s1, 512, %s29_s20, [#allocation6], %s286_s15, %s286_s15, %s287_s16  }
  0x19   :  { %279 = dma.done.wait [#allocation3], 256  }
  0x1a   :  { %280 = vsyncadd [#allocation3], 4294967040 }
  0x1b   :  { %281 = dma.done.wait [#allocation6], 512  }
  0x1c   :  { %282 = vsyncadd [#allocation6], 4294966784  ;;  %vm49_vm0 = vcmask 261120   ;;  %v48_v0 = vld [vmem:[#allocation5 + $0x18] sm:$0xff]  ;;  %v47_v1 = vld [vmem:[#allocation5 + $0x10] sm:$0xff] }
  0x1d   :  { %199 = vmatprep.subr.mxu0 %v48_v0  ;;  %v43_v2 = vld [vmem:[#allocation2] sm:$0xff]  ;;  %v44_v3 = vld [vmem:[#allocation2 + $0x8] sm:$0xff]  ;;  %v46_v4 = vld [vmem:[#allocation5 + $0x8] sm:$0xff] }
  0x1e   :  { %200 = vmatpush3.msra.mxu0 %v48_v0  ;;  %207 = vmatprep.mubr.msk.f32.mxu0 %vm49_vm0, %v43_v2  ;;  %v131_v5 = vmul.f32 %v43_v2, %v43_v2  ;;  %v132_v6 = vmul.f32 %v44_v3, %v44_v3  ;;  %v45_v7 = vld [vmem:[#allocation5] sm:$0xff]  ;;  %v192_v12 = vld [vmem:[%s337_s2] ss:$0 sm:$0xff]  ;;  %s289_s2 = smov [#allocation7]  }
  0x1f   :  { %201 = vmatprep.subr.mxu0 %v47_v1  ;;  %s177_s24 = sshll.u32 %s289_s2, 4  ;;  %s178_s24 = int_to_ptr.vmem [resolvable:$true] %s177_s24 }
  0x20   :  { %202 = vmatpush3.msra.mxu0 %v47_v1  ;;  %v133_v8 = vsel %vm49_vm0, %v131_v5, 0.0  ;;  %v136_v9 = vsel %vm49_vm0, %v132_v6, 0.0  ;;  %s259_s25 = scalar_lea.vmem %s178_s24, 256  ;;  %p264_p11 = scmp.lt.s32.totalorder %s178_s24, %s178_s24 }
  0x21   :  { %203 = vmatprep.subr.mxu0 %v46_v4  ;;  %134 = vadd.xlane.f32.xlu0 %v133_v8  ;;  %p260_p10 = scmp.ne.s32.totalorder %s178_s24, %s259_s25  ;;  %p265_p12 = scmp.lt.s32.totalorder %s259_s25, %s259_s25 }
  0x22   :  { %204 = vmatpush3.msra.mxu0 %v46_v4 }
  0x23   :  { %205 = vmatprep.subr.mxu0 %v45_v7  ;;  %p266_p13 = por %p265_p12, %p264_p11 }
  0x24   :  { %206 = vmatpush3.msra.mxu0 %v45_v7 }
  0x25   :  { %208 = vmatmul.mubr.msk.f32.vlgmr.msra.gmra.mxu0 %vm49_vm0, %v44_v3  ;;  %137 = vadd.xlane.f32.xlu0 %v136_v9  ;;  %p267_p0 = pnand %p266_p13, %p260_p10 }
  0xaa   :  { %v135_v10 = vpop.xlane.xlu0 %134 }
  0xab   :  { %v146_v17 = vadd.f32 %v192_v12, %v135_v10 }
  0xae   :  { %v138_v11 = vpop.xlane.xlu0 %137 }
  0xaf   :  { %v147_v13 = vadd.f32 %v192_v12, %v138_v11 }
  0xe5   :  { %v209_v14 = vpop.f32.mrf.mxu0 }
  0xe6   :  { %v149_v15 = vmul.f32 2.0, %v209_v14 }
  0xe7   :  { %v122_v16 = vpop.f32.mrf.mxu0 }
  0xe8   :  { %v151_v18 = vsub.f32 %v147_v13, %v149_v15  ;;  %v148_v19 = vmul.f32 2.0, %v122_v16 }
  0xea   :  { %v153_v20 = vmax.f32 %v151_v18, 0.0  ;;  %v150_v21 = vsub.f32 %v146_v17, %v148_v19 }
  0xec   :  { %215 = vrsqrt.f32 %v153_v20  ;;  %v152_v22 = vmax.f32 %v150_v21, 0.0  ;;  %vm163_vm1 = vcmp.eq.f32.partialorder %v153_v20, inf  ;;  %v166_v26 = vand.u32 2147483648, %v153_v20 }
  0xed   :  { %vm165_vm2 = vcmp.eq.f32.partialorder %v153_v20, 0.0 }
  0xee   :  { %217 = vrsqrt.f32 %v152_v22  ;;  %vm156_vm3 = vcmp.eq.f32.partialorder %v152_v22, inf  ;;  %v159_v29 = vand.u32 2147483648, %v152_v22  ;;  %vm158_vm4 = vcmp.eq.f32.partialorder %v152_v22, 0.0 }
  0xf9   :  { %v216_v23 = vpop.eup %215 }
  0xfa   :  { %v162_v24 = vmul.f32 %v216_v23, %v153_v20 }
  0xfb   :  { %v218_v25 = vpop.eup %217 }
  0xfc   :  { %v155_v27 = vmul.f32 %v218_v25, %v152_v22  ;;  %v164_v28 = vsel %vm163_vm1, %v153_v20, %v162_v24 }
  0xfd   :  { %v167_v30 = vsel %vm165_vm2, %v166_v26, %v164_v28 }
  0xfe   :  { %v157_v31 = vsel %vm156_vm3, %v152_v22, %v155_v27  ;;  %v169_v32 = vsub.f32 0.0, %v167_v30 }
  0xff   :  { %v160_v33 = vsel %vm158_vm4, %v159_v29, %v157_v31 }
 0x100   :  { %v168_v34 = vsub.f32 0.0, %v160_v33  ;;  %171 = vst [vmem:[#allocation7 + $0x8] sm:$0xff] %v169_v32 }
 0x102   :  { %170 = vst [vmem:[#allocation7] sm:$0xff] %v168_v34 }
 0x103   :  { %270 = shalt.err (!%p267_p0)
}
 0x104   :  { %183 = dma.vmem_to_hbm [thread:$0]  %s178_s24, 256, %s338_s3, [#allocation4], %s286_s15, %s286_s15, %s287_s16  }
 0x105   :  { %283 = dma.done.wait [#allocation4], 256  }
 0x106   :  { %284 = vsyncadd [#allocation4], 4294967040 }
 0x107   :  { %187 = vsyncpa [#allocation3], 1 }
 0x108   :  { %188 = vsyncpa [#allocation6], 1 }
 0x109   :  { %189 = vsyncpa [#allocation4], 1 }

</bundles_post_ra>
